<compile_context>
chip_gen: v7x
topology: tpu7x:2x2x1
jax: 0.10.0
libtpu: 0.0.40
codegen_flags: <defaults>
</compile_context>

<pallas_src>
import functools

import jax
import jax.numpy as jnp
from jax.experimental import pallas as pl
from jax.experimental.pallas import tpu as pltpu


def _ce_label_smooth_kernel(logits_ref, labels_ref, loss_ref, *, epsilon,
                            num_classes):
    """Per-row label-smoothed cross entropy for one batch tile.

    logits_ref: (TB, C) float  (promoted to f32 in-kernel)
    labels_ref: (TB, 1) int32
    loss_ref:   (TB, 1) float32 per-row loss (batch mean applied by wrapper)
    """
    x = logits_ref[...].astype(jnp.float32)            # (TB, C)
    labels = labels_ref[...]                            # (TB, 1) int32
    tb, c = x.shape

    # Numerically stable log-partition per row.  (x - row_max) feeds only exp,
    # so no (TB, C) 'shifted' temp is kept around for other uses.
    row_max = jnp.max(x, axis=1, keepdims=True)                         # (TB,1)
    lse = jnp.log(jnp.sum(jnp.exp(x - row_max), axis=1, keepdims=True))  # (TB,1)
    log_z = row_max + lse                                                # (TB,1)

    # log-prob at the true label: one-hot compare + single lane reduction.
    classes = jax.lax.broadcasted_iota(jnp.int32, (tb, c), 1)
    picked = jnp.sum(jnp.where(classes == labels, x, 0.0),
                     axis=1, keepdims=True)                              # (TB,1)
    sum_x = jnp.sum(x, axis=1, keepdims=True)                            # (TB,1)

    at_label = picked - log_z                          # log_probs[i, y_i]
    total = sum_x - jnp.float32(c) * log_z             # sum_j log_probs[i, j]

    loss_ref[...] = (-(1.0 - epsilon) * at_label
                     - (epsilon / num_classes) * total)


def _round_down8(x):
    return max(8, (x // 8) * 8)


def cross_entropy_label_smooth(logits, targets, *, num_classes=None,
                               epsilon=0.1,
                               target_block_bytes=4 * 1024 * 1024):
    """logits: (B, C) float, targets: (B,) int -> scalar f32 loss."""
    B, C = logits.shape
    if num_classes is None:
        num_classes = C

    bytes_in = jnp.dtype(logits.dtype).itemsize

    # Generation-aware VMEM capacity (v7x: 64 MiB, v5e/v6e: 128 MiB).
    try:
        vmem_cap = int(pltpu.get_tpu_info().vmem_capacity_bytes)
    except Exception:
        vmem_cap = 64 * 1024 * 1024  # conservative fallback (v7x-sized)

    # Per batch-row VMEM footprint: double-buffered input + ~3 f32 temps.
    per_row_bytes = C * (2 * bytes_in + 3 * 4) + 32
    vmem_budget = (vmem_cap * 3) // 4

    # Batch tile selection.
    if B < 8:
        tb = B  # block dim equals full array dim -> always legal
    else:
        tb = max(8, target_block_bytes // max(1, bytes_in * C))  # roofline-size
        tb = min(tb, max(8, vmem_budget // per_row_bytes))       # VMEM budget
        if B >= 16:
            tb = min(tb, (B + 1) // 2)   # keep grid >= 2 for v7x dual-TC
        tb = min(tb, B)
        tb = _round_down8(tb)
    grid = pl.cdiv(B, tb)

    # Scoped VMEM limit derived from the actual footprint (with headroom).
    footprint = tb * per_row_bytes + 4 * tb * 8
    vmem_limit = int(min(max(2 * footprint, 32 * 1024 * 1024),
                         (vmem_cap * 9) // 10))

    labels_2d = targets.astype(jnp.int32).reshape(B, 1)

    kernel = functools.partial(_ce_label_smooth_kernel,
                               epsilon=float(epsilon),
                               num_classes=int(num_classes))

    per_row = pl.pallas_call(
        kernel,
        out_shape=jax.ShapeDtypeStruct((B, 1), jnp.float32),
        grid=(grid,),
        in_specs=[
            pl.BlockSpec((tb, C), lambda i: (i, 0)),   # logits tile (ragged ok)
            pl.BlockSpec((tb, 1), lambda i: (i, 0)),   # labels tile
        ],
        out_specs=pl.BlockSpec((tb, 1), lambda i: (i, 0)),
        compiler_params=pltpu.CompilerParams(
            dimension_semantics=("parallel",),
            vmem_limit_bytes=vmem_limit,
        ),
    )(logits, labels_2d)

    # Tiny final reduction + batch mean in plain JAX (keeps grid fully parallel).
    return jnp.sum(per_row[:, 0]) / jnp.float32(B)


def cross_entropy_label_smooth_ref(logits, targets, *, num_classes=None,
                                   epsilon=0.1):
    """Pure-JAX reference mirroring the PyTorch forward."""
    B, C = logits.shape
    if num_classes is None:
        num_classes = C
    log_probs = jax.nn.log_softmax(logits.astype(jnp.float32), axis=1)
    onehot = jax.nn.one_hot(targets, C, dtype=jnp.float32)
    t = (1.0 - epsilon) * onehot + epsilon / num_classes
    return jnp.sum(jnp.mean(-t * log_probs, axis=0))


if __name__ == "__main__":
    key = jax.random.PRNGKey(0)

    # --- Test 1: small shapes, single tile (batch=8, num_classes=10). ---
    k1, k2, key = jax.random.split(key, 3)
    B1, C1 = 8, 10
    logits1 = jax.random.normal(k1, (B1, C1), dtype=jnp.float32)
    labels1 = jax.random.randint(k2, (B1,), 0, C1, dtype=jnp.int32)

    out1 = jax.block_until_ready(
        cross_entropy_label_smooth(logits1, labels1, epsilon=0.1))
    ref1 = jax.block_until_ready(
        cross_entropy_label_smooth_ref(logits1, labels1, epsilon=0.1))
    assert jnp.allclose(out1, ref1, rtol=1e-4, atol=1e-4), (out1, ref1)

    # --- Test 2: ragged batch -> multi-tile parallel grid, no padding. ---
    k3, k4, key = jax.random.split(key, 3)
    B2, C2 = 200, 384
    logits2 = jax.random.normal(k3, (B2, C2), dtype=jnp.float32)
    labels2 = jax.random.randint(k4, (B2,), 0, C2, dtype=jnp.int32)

    out2 = jax.block_until_ready(
        cross_entropy_label_smooth(logits2, labels2, epsilon=0.1))
    ref2 = jax.block_until_ready(
        cross_entropy_label_smooth_ref(logits2, labels2, epsilon=0.1))
    assert jnp.allclose(out2, ref2, rtol=1e-4, atol=1e-4), (out2, ref2)

    # --- Test 3: bf16 logits streamed natively (promoted in-kernel). ---
    k5, k6, _ = jax.random.split(key, 3)
    B3, C3 = 64, 256
    logits3 = jax.random.normal(k5, (B3, C3), dtype=jnp.bfloat16)
    labels3 = jax.random.randint(k6, (B3,), 0, C3, dtype=jnp.int32)

    out3 = jax.block_until_ready(
        cross_entropy_label_smooth(logits3, labels3, epsilon=0.1))
    ref3 = jax.block_until_ready(
        cross_entropy_label_smooth_ref(logits3, labels3, epsilon=0.1))
    assert jnp.allclose(out3, ref3, rtol=1e-3, atol=1e-3), (out3, ref3)

    print("KERNEL_OK")
</pallas_src>

<mosaic_0001>
module attributes {stable_mosaic.version = 11 : i64} {
  func.func @_ce_label_smooth_kernel(%arg0: i32, %arg1: memref<8x10xf32, #tpu.memory_space<vmem>>, %arg2: memref<8x1xi32, #tpu.memory_space<vmem>>, %arg3: memref<8x1xf32, #tpu.memory_space<vmem>>) attributes {dimension_semantics = [#tpu.dimension_semantics<parallel>], iteration_bounds = array<i64: 1>, scalar_prefetch = 0 : i64, scratch_operands = 0 : i64, tpu.core_type = #tpu.core_type<tc>, window_params = [{transform_indices = @transform_0, window_bounds = array<i64: 8, 10>}, {transform_indices = @transform_1, window_bounds = array<i64: 8, 1>}, {transform_indices = @transform_2, window_bounds = array<i64: 8, 1>}]} {
    %c0 = arith.constant 0 : index
    %c0_0 = arith.constant 0 : index
    %0 = vector.load %arg1[%c0, %c0_0] : memref<8x10xf32, #tpu.memory_space<vmem>>, vector<8x10xf32>
    %c0_1 = arith.constant 0 : index
    %c0_2 = arith.constant 0 : index
    %1 = vector.load %arg2[%c0_1, %c0_2] : memref<8x1xi32, #tpu.memory_space<vmem>>, vector<8x1xi32>
    %cst = arith.constant dense<0xFF800000> : vector<8xf32>
    %2 = vector.multi_reduction <maximumf>, %0, %cst [1] : vector<8x10xf32> to vector<8xf32>
    %3 = vector.shape_cast %2 : vector<8xf32> to vector<8x1xf32>
    %4 = vector.broadcast %3 : vector<8x1xf32> to vector<8x10xf32>
    %5 = arith.subf %0, %4 : vector<8x10xf32>
    %6 = math.exp %5 : vector<8x10xf32>
    %cst_3 = arith.constant dense<0.000000e+00> : vector<8xf32>
    %7 = vector.multi_reduction <add>, %6, %cst_3 [1] : vector<8x10xf32> to vector<8xf32>
    %8 = vector.shape_cast %7 : vector<8xf32> to vector<8x1xf32>
    %9 = math.log %8 : vector<8x1xf32>
    %10 = arith.addf %3, %9 : vector<8x1xf32>
    %11 = tpu.iota {dimensions = array<i32: 1>} : vector<8x10xi32>
    %12 = vector.broadcast %1 : vector<8x1xi32> to vector<8x10xi32>
    %13 = arith.cmpi eq, %11, %12 : vector<8x10xi32>
    %cst_4 = arith.constant 0.000000e+00 : f32
    %14 = vector.broadcast %cst_4 : f32 to vector<8x10xf32>
    %15 = arith.select %13, %0, %14 : vector<8x10xi1>, vector<8x10xf32>
    %cst_5 = arith.constant dense<0.000000e+00> : vector<8xf32>
    %16 = vector.multi_reduction <add>, %15, %cst_5 [1] : vector<8x10xf32> to vector<8xf32>
    %17 = vector.shape_cast %16 : vector<8xf32> to vector<8x1xf32>
    %cst_6 = arith.constant dense<0.000000e+00> : vector<8xf32>
    %18 = vector.multi_reduction <add>, %0, %cst_6 [1] : vector<8x10xf32> to vector<8xf32>
    %19 = vector.shape_cast %18 : vector<8xf32> to vector<8x1xf32>
    %20 = arith.subf %17, %10 : vector<8x1xf32>
    %cst_7 = arith.constant 1.000000e+01 : f32
    %21 = vector.broadcast %cst_7 : f32 to vector<8x1xf32>
    %22 = arith.mulf %21, %10 : vector<8x1xf32>
    %23 = arith.subf %19, %22 : vector<8x1xf32>
    %cst_8 = arith.constant -0.899999976 : f32
    %24 = vector.broadcast %cst_8 : f32 to vector<8x1xf32>
    %25 = arith.mulf %24, %20 : vector<8x1xf32>
    %cst_9 = arith.constant 0.00999999977 : f32
    %26 = vector.broadcast %cst_9 : f32 to vector<8x1xf32>
    %27 = arith.mulf %26, %23 : vector<8x1xf32>
    %28 = arith.subf %25, %27 : vector<8x1xf32>
    %c0_10 = arith.constant 0 : index
    %c0_11 = arith.constant 0 : index
    %29 = vector.load %arg3[%c0_10, %c0_11] : memref<8x1xf32, #tpu.memory_space<vmem>>, vector<8x1xf32>
    tpu.vector_store %arg3[%c0_10, %c0_11], %28 {strides = array<i32>} : memref<8x1xf32, #tpu.memory_space<vmem>>, vector<8x1xf32>,
    return
  }
  func.func @transform_0(%arg0: i32) -> (i32, i32) {
    %c0_i32 = arith.constant 0 : i32
    %c0_i32_0 = arith.constant 0 : i32
    return %arg0, %c0_i32 : i32, i32
  }
  func.func @transform_1(%arg0: i32) -> (i32, i32) {
    %c0_i32 = arith.constant 0 : i32
    %c0_i32_0 = arith.constant 0 : i32
    return %arg0, %c0_i32 : i32, i32
  }
  func.func @transform_2(%arg0: i32) -> (i32, i32) {
    %c0_i32 = arith.constant 0 : i32
    %c0_i32_0 = arith.constant 0 : i32
    return %arg0, %c0_i32 : i32, i32
  }
}

</mosaic_0001>

<bundles_post_ra>
// kernel: tpu_custom_call.1
= control target key start
LH: loop header
LB: loop body
LE: loop exit
PB: predicated region body
PF: predicated region fallthrough
CT: control target
= control target key end

     0   :  { %vm13_vm0 = vcmask 80896   ;;  %v57_v1 = vmov 0   ;;  %v26_v7 = vlaneseq  ;;  %vm45_vm2 = vcmask 7168   ;;  %s86_s0 = inlined_call_operand.vmem [shape: f32[8,10], index: 0, kind: input, shape index: {}]   ;;  %s87_s1 = inlined_call_operand.vmem [shape: s32[8,1], index: 1, kind: input, shape index: {}]   ;;  %s88_s2 = inlined_call_operand.vmem [shape: f32[8,1], index: 2, kind: output, shape index: {}]  }
   0x1   :  { %v11_v0 = vld [vmem:[%s86_s0] sm:$0xff]  ;;  %52 = vset.pattern.permute.xlu0 %v57_v1 }
   0x2   :  { %v14_v2 = vsel %vm13_vm0, %v11_v0, -inf  ;;  %v12_v3 = vld [vmem:[%s87_s1] sm:$0xff]  ;;  %v27_v8 = vand.u32 127, %v26_v7  ;;  %v36_v14 = vsel %vm13_vm0, %v11_v0, 0.0 }
   0x3   :  { %15 = vmax.xlane.f32.xlu0 %v14_v2 }
  0x19   :  { %29 = vperm.xlu0 %52, %v12_v3  }
  0x90   :  { %v16_v4 = vpop.xlane.xlu0 %15 }
  0x91   :  { %v17_v5 = vsub.f32 %v11_v0, %v16_v4 }
  0x93   :  { %v18_v6 = vmul.f32 1.442695, %v17_v5 }
  0x95   :  { %53 = vpow2.f32 %v18_v6 }
  0x98   :  { %v30_v9 = vpop.permute.xlu0 %29 }
  0x99   :  { %vm31_vm1 = vcmp.eq.s32.totalorder %v27_v8, %v30_v9 }
  0x9a   :  { %v32_v11 = vsel %vm31_vm1, %v11_v0, 0.0 }
  0x9b   :  { %v33_v13 = vsel %vm13_vm0, %v32_v11, 0.0 }
  0x9f   :  { %v54_v10 = vpop.eup %53 }
  0xa0   :  { %v20_v12 = vsel %vm13_vm0, %v54_v10, 0.0 }
  0xa1   :  { %21 = vadd.xlane.f32.xlu1 %v20_v12 }
  0xa5   :  { %34 = vadd.xlane.f32.xlu1 %v33_v13 }
  0xa9   :  { %37 = vadd.xlane.f32.xlu1 %v36_v14 }
 0x12e   :  { %v22_v15 = vpop.xlane.xlu1 %21 }
 0x12f   :  { %55 = vlog2.f32 %v22_v15 }
 0x132   :  { %v35_v16 = vpop.xlane.xlu1 %34 }
 0x136   :  { %v38_v20 = vpop.xlane.xlu1 %37 }
 0x139   :  { %v56_v17 = vpop.eup %55 }
 0x13a   :  { %v24_v18 = vmul.f32 0.6931472, %v56_v17 }
 0x13c   :  { %v25_v19 = vadd.f32 %v24_v18, %v16_v4 }
 0x13e   :  { %v39_v21 = vsub.f32 %v35_v16, %v25_v19  ;;  %v40_v22 = vmul.f32 10.0, %v25_v19 }
 0x140   :  { %v41_v23 = vsub.f32 %v38_v20, %v40_v22  ;;  %v42_v24 = vmul.f32 -0.9, %v39_v21 }
 0x142   :  { %v43_v25 = vmul.f32 0.01, %v41_v23 }
 0x144   :  { %v44_v26 = vsub.f32 %v42_v24, %v43_v25 }
 0x146   :  { %46 = vst.msk [vmem:[%s88_s2] sm:$0xff] %vm45_vm2, %v44_v26 }

</bundles_post_ra>
